<compile_context>
chip_gen: v7x
topology: tpu7x:2x2x1
jax: 0.10.0
libtpu: 0.0.40
codegen_flags: <defaults>
</compile_context>

<pallas_src>
import functools

import jax
import jax.numpy as jnp
from jax import lax
from jax.experimental import pallas as pl
from jax.experimental.pallas import tpu as pltpu


# ------------------------------ helpers ------------------------------------ #

def _round_up(x, m):
    return ((x + m - 1) // m) * m


def _pad2d(x, rows, cols):
    r, c = x.shape
    if r == rows and c == cols:
        return x
    return jnp.pad(x, ((0, rows - r), (0, cols - c)))


# ----------------- tiled matmul (+ fused segmented F.normalize) ------------- #
#
# A (adjacency) is pre-padded and pre-cast to bf16 once at model init (same MXU
# numerics as casting in-kernel, but half the HBM bytes on the dominant stream).
# B (embeddings) is padded/cast per call (it changes each hop) and kept fully
# resident in VMEM when small enough; otherwise streamed in (tk, Np) tiles.
# The f32 accumulation happens directly in the output block (its block index is
# constant across the K grid axis), so no extra VMEM scratch is needed.
# The epilogue applies F.normalize independently to each 128-aligned lane
# segment, which lets several RHS matrices be batched into a single matmul.

def _matmul_kernel(a_ref, b_ref, o_ref, *, normalize, seg_w, n_segs,
                   b_resident, tk):
    k = pl.program_id(1)

    @pl.when(k == 0)
    def _init():
        o_ref[...] = jnp.zeros_like(o_ref)

    a = a_ref[...]                                   # bf16 tile
    if b_resident:
        off = pl.multiple_of(k * tk, tk)
        b = b_ref[pl.ds(off, tk), :]                 # slice resident bf16 B
    else:
        b = b_ref[...]
    o_ref[...] += jnp.dot(a, b, preferred_element_type=jnp.float32)

    if normalize:
        @pl.when(k == pl.num_programs(1) - 1)
        def _fin():
            c = o_ref[...]
            # F.normalize(dim=-1): x * rsqrt(max(||x||^2, eps)); applied per
            # 128-aligned lane segment so batched RHS matrices stay independent.
            for s in range(n_segs):
                seg = c[:, s * seg_w:(s + 1) * seg_w]
                ss = jnp.sum(seg * seg, axis=-1, keepdims=True)
                o_ref[:, s * seg_w:(s + 1) * seg_w] = (
                    seg * lax.rsqrt(jnp.maximum(ss, 1e-24)))


class AdjMatmul:
    """Adjacency operand padded + cast to bf16 once; fixed (tm, tk) tile plan."""

    # TODO(synk): at real graph scale the dense adjacency itself is the blocker;
    # replace with a CSR / segment-sum scatter-add kernel (scalar-prefetch row
    # pointers + pl.ds windows).
    # TODO(synk): on v5e/v6e a 0/1 or coarsely-quantized adjacency could use the
    # int8 MXU path (4x fewer HBM bytes); skipped because v7x has no integer MXU.

    def __init__(self, a, *, tm_max=512, tk_max=2048):
        M, K = a.shape
        self.M, self.K = M, K
        Mp = _round_up(M, 16)                        # 16: bf16 sublane packing
        self.tm = min(tm_max, Mp)
        self.Mp = _round_up(Mp, self.tm)
        Kp = _round_up(K, 128)
        self.tk = min(tk_max, Kp)
        self.Kp = _round_up(Kp, self.tk)
        # NOTE(v7x): for very large M prefer Mp//tm >= 2 so both TCs get work.
        self.a = _pad2d(a, self.Mp, self.Kp).astype(jnp.bfloat16)

    def __call__(self, rhs, normalize=True):
        single = not isinstance(rhs, (list, tuple))
        rhs_list = [rhs] if single else list(rhs)
        D = rhs_list[0].shape[1]
        Dp = _round_up(D, 128)
        S = len(rhs_list)
        Np = S * Dp
        b = jnp.concatenate(
            [_pad2d(r, self.Kp, Dp) for r in rhs_list], axis=1
        ).astype(jnp.bfloat16)

        b_bytes = self.Kp * Np * 2
        b_resident = b_bytes <= (6 << 20)            # keep B VMEM-resident
        if b_resident:
            b_spec = pl.BlockSpec((self.Kp, Np), lambda i, k: (0, 0))
        else:
            b_spec = pl.BlockSpec((self.tk, Np), lambda i, k: (k, 0))

        est = (2 * self.tm * self.tk * 2             # A tiles (double-buffered)
               + (2 * b_bytes if b_resident else 2 * self.tk * Np * 2)
               + 2 * self.tm * Np * 4)               # f32 output block
        vmem_limit = min(max(int(est * 1.25) + (2 << 20), 16 << 20), 48 << 20)

        out = pl.pallas_call(
            functools.partial(_matmul_kernel, normalize=normalize, seg_w=Dp,
                              n_segs=S, b_resident=b_resident, tk=self.tk),
            grid=(self.Mp // self.tm, self.Kp // self.tk),
            in_specs=[pl.BlockSpec((self.tm, self.tk), lambda i, k: (i, k)),
                      b_spec],
            out_specs=pl.BlockSpec((self.tm, Np), lambda i, k: (i, 0)),
            out_shape=jax.ShapeDtypeStruct((self.Mp, Np), jnp.float32),
            compiler_params=pltpu.CompilerParams(
                dimension_semantics=("parallel", "arbitrary"),
                vmem_limit_bytes=vmem_limit),
            cost_estimate=pl.CostEstimate(
                flops=2 * self.Mp * self.Kp * Np,
                transcendentals=self.Mp * S if normalize else 0,
                bytes_accessed=2 * self.Mp * self.Kp + 2 * self.Kp * Np
                               + 4 * self.Mp * Np),
        )(self.a, b)

        outs = [out[:self.M, s * Dp:s * Dp + D] for s in range(S)]
        return outs[0] if single else outs


# -------------------- fused BPR + SSL loss (row-tiled) ---------------------- #

def _fused_loss_kernel(*refs, decay, scale, batch, tq, use_ssl):
    if use_ssl:
        u_ref, p_ref, n_ref, kg_ref, ii_ref, mf_ref, emb_ref, ssl_ref = refs
    else:
        u_ref, p_ref, n_ref, mf_ref, emb_ref = refs

    i = pl.program_id(0)

    @pl.when(i == 0)
    def _init():
        mf_ref[0, 0] = jnp.float32(0.0)
        emb_ref[0, 0] = jnp.float32(0.0)
        if use_ssl:
            ssl_ref[0, 0] = jnp.float32(0.0)

    u = u_ref[...]
    p = p_ref[...]
    ng = n_ref[...]
    pos = jnp.sum(u * p, axis=1, keepdims=True)
    neg = jnp.sum(u * ng, axis=1, keepdims=True)
    x = pos - neg
    # numerically stable logsigmoid(x) = min(x, 0) - log(1 + exp(-|x|))
    log_sig = jnp.minimum(x, 0.0) - jnp.log(1.0 + jnp.exp(-jnp.abs(x)))
    mf_ref[0, 0] += jnp.sum(log_sig)
    emb_ref[0, 0] += jnp.sum(u * u) + jnp.sum(p * p) + jnp.sum(ng * ng)

    if use_ssl:
        kg = kg_ref[...]                             # (tq, D) query rows
        kg_n = kg * lax.rsqrt(jnp.sum(kg * kg, axis=-1, keepdims=True) + 1e-24)
        ii = ii_ref[...]                             # full (B, D) batch, resident
        ii_n = ii * lax.rsqrt(jnp.sum(ii * ii, axis=-1, keepdims=True) + 1e-24)
        # contract the emb dim of BOTH operands (kg_n @ ii_n.T, no XLU transpose)
        scores = lax.dot_general(kg_n, ii_n, (((1,), (1,)), ((), ())),
                                 preferred_element_type=jnp.float32) * scale
        m = jnp.max(scores, axis=-1, keepdims=True)
        lse = m + jnp.log(jnp.sum(jnp.exp(scores - m), axis=-1, keepdims=True))
        off = pl.multiple_of(i * tq, tq)
        ii_rows = ii_ref[pl.ds(off, tq), :]          # rows aligned with this tile
        ii_rows_n = ii_rows * lax.rsqrt(
            jnp.sum(ii_rows * ii_rows, axis=-1, keepdims=True) + 1e-24)
        diag = jnp.sum(kg_n * ii_rows_n, axis=-1, keepdims=True) * scale
        ssl_ref[0, 0] += jnp.sum(diag - lse)         # sum(log_softmax diag block)

    @pl.when(i == pl.num_programs(0) - 1)
    def _fin():
        mf_ref[0, 0] = -mf_ref[0, 0] / batch
        emb_ref[0, 0] = decay * 0.5 * emb_ref[0, 0] / batch
        if use_ssl:
            ssl_ref[0, 0] = -ssl_ref[0, 0] / batch


def _choose_row_tile(B, tq_max=512):
    if B <= tq_max:
        return B
    for tq in range(tq_max - (tq_max % 8), 7, -8):
        if B % tq == 0:
            return tq
    return B   # fall back to a single (large) row tile


def pallas_fused_loss(u_e, pos_e, neg_e, decay, *, u_kg=None, u_ii=None,
                      scale=1.0, tq_max=512):
    """Fused BPR (+ optional SSL) loss; one pallas_call, tiled over batch rows.

    The SSL mean / logsumexp assume the row tiles exactly cover the true batch
    (tq divides B, no padded rows), which _choose_row_tile guarantees.
    """
    B, D = u_e.shape
    use_ssl = u_kg is not None
    tq = _choose_row_tile(B, tq_max)
    tile_spec = pl.BlockSpec((tq, D), lambda i: (i, 0))
    smem_spec = pl.BlockSpec(memory_space=pltpu.MemorySpace.SMEM)
    in_specs = [tile_spec, tile_spec, tile_spec]
    inputs = [u_e, pos_e, neg_e]
    if use_ssl:
        in_specs += [tile_spec, pl.BlockSpec((B, D), lambda i: (0, 0))]
        inputs += [u_kg, u_ii]
    n_out = 3 if use_ssl else 2
    outs = pl.pallas_call(
        functools.partial(_fused_loss_kernel, decay=decay, scale=scale,
                          batch=B, tq=tq, use_ssl=use_ssl),
        grid=(B // tq,),
        in_specs=in_specs,
        out_specs=tuple([smem_spec] * n_out),
        out_shape=tuple([jax.ShapeDtypeStruct((1, 1), jnp.float32)] * n_out),
        compiler_params=pltpu.CompilerParams(
            dimension_semantics=("arbitrary",)),
    )(*inputs)
    if use_ssl:
        return outs[0][0, 0], outs[1][0, 0], outs[2][0, 0]
    return outs[0][0, 0], outs[1][0, 0], jnp.float32(0.0)


# ----------------------- Recommender (JAX wrapper) ------------------------- #

def xavier_uniform(key, shape):
    fan_out, fan_in = shape[0], shape[1]
    bound = (6.0 / (fan_in + fan_out)) ** 0.5
    return jax.random.uniform(key, shape, jnp.float32, -bound, bound)


class RecommenderPallas:
    def __init__(self, data_config, args_config, multi_hops, key):
        self.n_users = data_config["n_users"]
        self.n_items = data_config["n_items"]
        self.n_relations = data_config["n_relations"]
        self.n_entities = data_config["n_entities"]
        self.n_nodes = data_config["n_nodes"]
        self.decay = args_config["l2"]
        self.emb_size = args_config["dim"]
        self.context_hops = args_config["context_hops"]
        self.mode = args_config["mode"]
        self.ssl = args_config["ssl"]
        self.scale = args_config["scale"]
        self.alpha = args_config["alpha"]

        ui_mat, kg_mat, ii_mat, kg_pairs = multi_hops
        # static adjacencies are padded + bf16-cast ONCE here, so no per-call
        # re-padding / re-casting HBM traffic in the forward pass
        self.ui_mm = AdjMatmul(ui_mat)
        self.kg_mm = AdjMatmul(kg_mat)
        self.ii_mm = AdjMatmul(ii_mat)
        self.kg_pairs = kg_pairs

        k1, k2 = jax.random.split(key)
        self.all_embed = xavier_uniform(k1, (self.n_nodes, self.emb_size))
        self.weight = xavier_uniform(k2, (self.n_relations - 1, self.emb_size))

    # GraphConv.forward (dropout never applied in the reference forward path)
    def gcn(self, entity_emb, item_emb):
        entity_multi = [entity_emb]
        item_multi = [item_emb]
        # hop-invariant work hoisted out of the loop: relation-weight gather and
        # the ii aggregation (it always reads the ORIGINAL item_emb).
        w_gather = self.weight[self.kg_pairs[:, 0] - 1]
        item_agg = None
        if self.context_hops > 0:
            item_agg = self.ii_mm(item_emb, normalize=True)
        e = entity_emb
        for _ in range(self.context_hops):
            # TODO(synk): move this row gather into the kernel via
            # PrefetchScalarGridSpec scalar-prefetched tail indices + DMA gather
            # into a double-buffered VMEM scratch; kept as plain-JAX glue here.
            neigh = e[self.kg_pairs[:, 1]] * w_gather   # precomputed eg*wg
            e = self.kg_mm(neigh, normalize=True)
            entity_multi.append(e)
            item_multi.append(item_agg)
        return entity_multi, item_multi

    def generate(self):
        user_emb = self.all_embed[: self.n_users]
        entity_emb = self.all_embed[self.n_users:]
        item_emb = entity_emb[: self.n_items]

        entity_kg_multi, item_ii_multi = self.gcn(entity_emb, item_emb)
        item_kg_multi = [e[: self.n_items] for e in entity_kg_multi]

        item_fuse_multi = []
        for i in range(self.context_hops + 1):
            if self.mode == "kg":
                item_fuse_multi.append(item_kg_multi[i])
            elif self.mode == "ii":
                item_fuse_multi.append(item_ii_multi[i])
            elif self.mode == "fuse":
                item_fuse_multi.append(item_kg_multi[i] + item_ii_multi[i])

        item_gcn_emb = item_fuse_multi[0]
        for i in range(1, self.context_hops + 1):
            item_gcn_emb = item_gcn_emb + item_fuse_multi[i]

        # All ui_mat matmuls of both user branches batched into ONE pallas_call
        # (ui_mat read from HBM once): unique RHS = item_emb (shared by the kg
        # and ii hop-1 terms), the distinct kg hop embeddings, and the single
        # deduplicated ii aggregation (identical across hops >= 2).
        hops = self.context_hops
        rhs, tags = [], []
        if hops >= 1:
            rhs.append(item_kg_multi[0]); tags.append("shared0")
            for j in range(1, hops):
                rhs.append(item_kg_multi[j]); tags.append("kg%d" % j)
            if hops >= 2:
                rhs.append(item_ii_multi[1]); tags.append("ii_shared")
        res = dict(zip(tags, self.ui_mm(rhs, normalize=True))) if rhs else {}

        user_gcn_emb_kg = user_emb
        user_gcn_emb_ii = user_emb
        if hops >= 1:
            user_gcn_emb_kg = user_gcn_emb_kg + res["shared0"]
            user_gcn_emb_ii = user_gcn_emb_ii + res["shared0"]
            for j in range(1, hops):
                user_gcn_emb_kg = user_gcn_emb_kg + res["kg%d" % j]
            if hops >= 2:
                user_gcn_emb_ii = (user_gcn_emb_ii
                                   + float(hops - 1) * res["ii_shared"])

        if self.mode == "kg":
            user_gcn_emb = user_gcn_emb_kg
        elif self.mode == "ii":
            user_gcn_emb = user_gcn_emb_ii
        else:  # fuse (base user_emb counted twice, matching the PyTorch reference)
            user_gcn_emb = user_gcn_emb_kg + user_gcn_emb_ii

        if self.ssl == 1:
            return item_gcn_emb, user_gcn_emb, (user_gcn_emb_kg, user_gcn_emb_ii)
        return item_gcn_emb, user_gcn_emb

    def forward(self, batch):
        user = batch["users"]
        pos_item = batch["pos_items"]
        neg_item = batch["neg_items"]

        if self.ssl == 1:
            item_gcn_emb, user_gcn_emb, (u_kg_all, u_ii_all) = self.generate()
        else:
            item_gcn_emb, user_gcn_emb = self.generate()

        # TODO(synk): batch row gathers kept as plain-JAX glue (tiny vs matmuls).
        u_e = user_gcn_emb[user]
        pos_e = item_gcn_emb[pos_item]
        neg_e = item_gcn_emb[neg_item]

        if self.ssl == 1:
            mf_loss, emb_loss, ssl_loss = pallas_fused_loss(
                u_e, pos_e, neg_e, self.decay,
                u_kg=u_kg_all[user], u_ii=u_ii_all[user], scale=self.scale)
            return mf_loss + emb_loss + self.alpha * ssl_loss, mf_loss, emb_loss
        mf_loss, emb_loss, _ = pallas_fused_loss(u_e, pos_e, neg_e, self.decay)
        return mf_loss + emb_loss, mf_loss, emb_loss


# --------------------------------- main ------------------------------------ #

if __name__ == "__main__":
    key = jax.random.PRNGKey(0)

    n_users, n_items, n_entities = 8, 16, 24
    n_nodes = n_users + n_entities
    n_relations = 4
    emb_dim = 32
    context_hops = 2
    n_pairs = 40
    batch_size = 8

    ks = jax.random.split(key, 9)
    # TODO(synk): original code uses torch.sparse adjacency matrices; synthesized
    # dense here.  A CSR/segment-sum kernel is needed at real graph scale.
    ui_mat = jax.random.uniform(ks[0], (n_users, n_items), jnp.float32)
    kg_mat = jax.random.uniform(ks[1], (n_entities, n_pairs), jnp.float32)
    ii_mat = jax.random.uniform(ks[2], (n_items, n_items), jnp.float32)
    rels = jax.random.randint(ks[3], (n_pairs,), 1, n_relations, dtype=jnp.int32)
    tails = jax.random.randint(ks[4], (n_pairs,), 0, n_entities, dtype=jnp.int32)
    kg_pairs = jnp.stack([rels, tails], axis=1)
    multi_hops = [ui_mat, kg_mat, ii_mat, kg_pairs]

    data_config = dict(n_users=n_users, n_items=n_items, n_relations=n_relations,
                       n_entities=n_entities, n_nodes=n_nodes)
    args_config = dict(l2=1e-4, dim=emb_dim, context_hops=context_hops,
                       mess_dropout=False, mess_dropout_rate=0.1,
                       mode="fuse", ssl=1, scale=10.0, alpha=0.2)

    model = RecommenderPallas(data_config, args_config, multi_hops, ks[5])

    batch = {
        "users": jax.random.randint(ks[6], (batch_size,), 0, n_users, dtype=jnp.int32),
        "pos_items": jax.random.randint(ks[7], (batch_size,), 0, n_items, dtype=jnp.int32),
        "neg_items": jax.random.randint(ks[8], (batch_size,), 0, n_items, dtype=jnp.int32),
    }

    loss, mf_loss, emb_loss = model.forward(batch)
    jax.block_until_ready((loss, mf_loss, emb_loss))
    print("KERNEL_OK")
</pallas_src>

<mosaic_0001>
module attributes {stable_mosaic.version = 11 : i64} {
  func.func @_matmul_kernel(%arg0: i32, %arg1: i32, %arg2: memref<16x128xbf16, #tpu.memory_space<vmem>>, %arg3: memref<128x128xbf16, #tpu.memory_space<vmem>>, %arg4: memref<16x128xf32, #tpu.memory_space<vmem>>) attributes {dimension_semantics = [#tpu.dimension_semantics<parallel>, #tpu.dimension_semantics<arbitrary>], iteration_bounds = array<i64: 1, 1>, scalar_prefetch = 0 : i64, scratch_operands = 0 : i64, tpu.core_type = #tpu.core_type<tc>, window_params = [{transform_indices = @transform_0, window_bounds = array<i64: 16, 128>}, {pipeline_mode = #tpu.pipeline_mode<synchronous>, transform_indices = @transform_1, window_bounds = array<i64: 128, 128>}, {transform_indices = @transform_2, window_bounds = array<i64: 16, 128>}]} {
    %c0_i32 = arith.constant 0 : i32
    %0 = arith.cmpi eq, %arg1, %c0_i32 : i32
    %1 = arith.extui %0 : i1 to i32
    %c0_i32_0 = arith.constant 0 : i32
    %2 = arith.cmpi ne, %1, %c0_i32_0 : i32
    scf.if %2 {
      %cst_9 = arith.constant 0.000000e+00 : f32
      %15 = vector.broadcast %cst_9 : f32 to vector<16x128xf32>
      %c0_10 = arith.constant 0 : index
      %c0_11 = arith.constant 0 : index
      %16 = vector.load %arg4[%c0_10, %c0_11] : memref<16x128xf32, #tpu.memory_space<vmem>>, vector<16x128xf32>
      tpu.vector_store %arg4[%c0_10, %c0_11], %15 {strides = array<i32>} : memref<16x128xf32, #tpu.memory_space<vmem>>, vector<16x128xf32>,
    } else {
    }
    %c0 = arith.constant 0 : index
    %c0_1 = arith.constant 0 : index
    %3 = vector.load %arg2[%c0, %c0_1] : memref<16x128xbf16, #tpu.memory_space<vmem>>, vector<16x128xbf16>
    %c128_i32 = arith.constant 128 : i32
    %4 = arith.muli %arg1, %c128_i32 : i32
    %5 = tpu.assume_multiple %4, 128 : i32
    %6 = arith.index_cast %5 : i32 to index
    %c0_2 = arith.constant 0 : index
    %7 = vector.load %arg3[%6, %c0_2] : memref<128x128xbf16, #tpu.memory_space<vmem>>, vector<128x128xbf16>
    %c0_3 = arith.constant 0 : index
    %c0_4 = arith.constant 0 : index
    %8 = vector.load %arg4[%c0_3, %c0_4] : memref<16x128xf32, #tpu.memory_space<vmem>>, vector<16x128xf32>
    %cst = arith.constant dense<0.000000e+00> : vector<16x128xf32>
    %9 = tpu.matmul %3, %7, %cst {dimension_numbers = #tpu.dot_dimension_numbers<[1], [0], [0], [1], [0, 0, 1, 1], [], []>} : vector<16x128xbf16>, vector<128x128xbf16>, vector<16x128xf32> -> vector<16x128xf32>
    %10 = arith.addf %8, %9 : vector<16x128xf32>
    %c0_5 = arith.constant 0 : index
    %c0_6 = arith.constant 0 : index
    %11 = vector.load %arg4[%c0_5, %c0_6] : memref<16x128xf32, #tpu.memory_space<vmem>>, vector<16x128xf32>
    tpu.vector_store %arg4[%c0_5, %c0_6], %10 {strides = array<i32>} : memref<16x128xf32, #tpu.memory_space<vmem>>, vector<16x128xf32>,
    %c0_i32_7 = arith.constant 0 : i32
    %12 = arith.cmpi eq, %arg1, %c0_i32_7 : i32
    %13 = arith.extui %12 : i1 to i32
    %c0_i32_8 = arith.constant 0 : i32
    %14 = arith.cmpi ne, %13, %c0_i32_8 : i32
    scf.if %14 {
      %c0_9 = arith.constant 0 : index
      %c0_10 = arith.constant 0 : index
      %15 = vector.load %arg4[%c0_9, %c0_10] : memref<16x128xf32, #tpu.memory_space<vmem>>, vector<16x128xf32>
      %16 = arith.mulf %15, %15 : vector<16x128xf32>
      %cst_11 = arith.constant dense<0.000000e+00> : vector<16xf32>
      %17 = vector.multi_reduction <add>, %16, %cst_11 [1] : vector<16x128xf32> to vector<16xf32>
      %18 = vector.shape_cast %17 : vector<16xf32> to vector<16x1xf32>
      %cst_12 = arith.constant 1.000000e-24 : f32
      %19 = vector.broadcast %cst_12 : f32 to vector<16x1xf32>
      %20 = arith.maximumf %18, %19 : vector<16x1xf32>
      %21 = math.rsqrt %20 : vector<16x1xf32>
      %22 = vector.broadcast %21 : vector<16x1xf32> to vector<16x128xf32>
      %23 = arith.mulf %15, %22 : vector<16x128xf32>
      %c0_13 = arith.constant 0 : index
      %c0_14 = arith.constant 0 : index
      %24 = vector.load %arg4[%c0_13, %c0_14] : memref<16x128xf32, #tpu.memory_space<vmem>>, vector<16x128xf32>
      tpu.vector_store %arg4[%c0_13, %c0_14], %23 {strides = array<i32>} : memref<16x128xf32, #tpu.memory_space<vmem>>, vector<16x128xf32>,
    } else {
    }
    return
  }
  func.func @transform_0(%arg0: i32, %arg1: i32) -> (i32, i32) {
    %c0_i32 = arith.constant 0 : i32
    return %arg0, %arg1 : i32, i32
  }
  func.func @transform_1(%arg0: i32, %arg1: i32) -> (i32, i32) {
    %c0_i32 = arith.constant 0 : i32
    %c0_i32_0 = arith.constant 0 : i32
    %c0_i32_1 = arith.constant 0 : i32
    return %c0_i32, %c0_i32_0 : i32, i32
  }
  func.func @transform_2(%arg0: i32, %arg1: i32) -> (i32, i32) {
    %c0_i32 = arith.constant 0 : i32
    %c0_i32_0 = arith.constant 0 : i32
    return %arg0, %c0_i32 : i32, i32
  }
}

</mosaic_0001>

<bundles_post_ra>
// kernel: tpu_custom_call.1
= control target key start
LH: loop header
LB: loop body
LE: loop exit
PB: predicated region body
PF: predicated region fallthrough
CT: control target
= control target key end

     0   :  { %7 = vsyncpa [#allocation3], 0  ;;  %s402_s0 = inlined_call_operand.hbm [shape: bf16[16,128], index: 0, kind: input, shape index: {}]   ;;  %s403_s1 = inlined_call_operand.hbm [shape: bf16[128,128], index: 1, kind: input, shape index: {}]   ;;  %s404_s2 = inlined_call_operand.hbm [shape: f32[16,128], index: 2, kind: output, shape index: {}]  }
   0x1   :  { %8 = vsyncpa [#allocation6], 0 }
   0x2   :  { %9 = vsyncpa [#allocation4], 0  ;;  %s342_s9 = smov [#allocation2]   ;;  %s270_s13 = scalar_lea.hbm %s402_s0, 128 }
   0x3   :  { %s15_s10 = sshll.u32 %s342_s9, 4  ;;  %p271_p0 = scmp.ne.s32.totalorder %s402_s0, %s270_s13  ;;  %s16_s10 = int_to_ptr.vmem [resolvable:$true] %s15_s10 }
   0x4   :  { %p274_p1 = scmp.lt.u32.totalorder %s270_s13, %s402_s0 }
   0x6   :  { %p276_p2 = pnand %p274_p1, %p271_p0 }
   0x8   :  { %279 = shalt.err (!%p276_p2)
}
   0x9   :  { %s280_s18 = scalar_lea.vmem %s16_s10, 128  ;;  %p285_p4 = scmp.lt.s32.totalorder %s16_s10, %s16_s10 }
   0xa   :  { %p281_p3 = scmp.ne.s32.totalorder %s16_s10, %s280_s18  ;;  %p286_p5 = scmp.lt.s32.totalorder %s280_s18, %s280_s18 }
   0xc   :  { %p287_p6 = por %p286_p5, %p285_p4 }
   0xe   :  { %p288_p7 = pnand %p287_p6, %p281_p3 }
  0x10   :  { %291 = shalt.err (!%p288_p7)
}
  0x11   :  { %s343_s19 = smov 64   ;;  %s344_s20 = smov 4  }
  0x12   :  { %21 = dma.hbm_to_vmem [thread:$0]  %s402_s0, 128, %s16_s10, [#allocation3], %s343_s19, %s343_s19, %s344_s20  }
  0x13   :  { %s345_s23 = smov [#allocation5]   ;;  %s292_s27 = scalar_lea.hbm %s403_s1, 1024 }
  0x14   :  { %s27_s24 = sshll.u32 %s345_s23, 4  ;;  %p293_p8 = scmp.ne.s32.totalorder %s403_s1, %s292_s27  ;;  %s28_s24 = int_to_ptr.vmem [resolvable:$true] %s27_s24 }
  0x15   :  { %p296_p9 = scmp.lt.u32.totalorder %s292_s27, %s403_s1 }
  0x17   :  { %p298_p10 = pnand %p296_p9, %p293_p8 }
  0x19   :  { %301 = shalt.err (!%p298_p10)
}
  0x1a   :  { %s302_s4 = scalar_lea.vmem %s28_s24, 1024  ;;  %p307_p12 = scmp.lt.s32.totalorder %s28_s24, %s28_s24 }
  0x1b   :  { %p303_p11 = scmp.ne.s32.totalorder %s28_s24, %s302_s4  ;;  %p308_p13 = scmp.lt.s32.totalorder %s302_s4, %s302_s4 }
  0x1d   :  { %p309_p0 = por %p308_p13, %p307_p12 }
  0x1f   :  { %p310_p1 = pnand %p309_p0, %p303_p11 }
  0x21   :  { %313 = shalt.err (!%p310_p1)
}
  0x22   :  { %33 = dma.hbm_to_vmem [thread:$0]  %s403_s1, 1024, %s28_s24, [#allocation6], %s343_s19, %s343_s19, %s344_s20  }
  0x23   :  { %336 = dma.done.wait [#allocation3], 128  }
  0x24   :  { %337 = vsyncadd [#allocation3], 4294967168 }
  0x25   :  { %338 = dma.done.wait [#allocation6], 1024  }
  0x26   :  { %339 = vsyncadd [#allocation6], 4294966272  ;;  %v346_v0 = vmov 0.0   ;;  %vm347_vm0 = vmmov 0   ;;  %v257_v1 = vld [vmem:[#allocation5] sm:$0xff]   ;;  %v258_v2 = vld [vmem:[#allocation5 + $0x8] sm:$0xff]  }
  0x27   :  { %228 = vmatprep.subr.bf16.mxu0 %v346_v0  ;;  %244 = vmatprep.mubr.msk.bf16.mxu0 %vm347_vm0, %v346_v0  ;;  %v259_v3 = vld [vmem:[#allocation5 + $0x10] sm:$0xff]   ;;  %v260_v4 = vld [vmem:[#allocation5 + $0x18] sm:$0xff]   ;;  %v261_v5 = vld [vmem:[#allocation5 + $0x20] sm:$0xff]   ;;  %s348_s1 = smov [#allocation7]  }
  0x28   :  { %229 = vmatpush3.bf16.msra.mxu0 %v257_v1  ;;  %v262_v6 = vld [vmem:[#allocation5 + $0x28] sm:$0xff]   ;;  %v263_v7 = vld [vmem:[#allocation5 + $0x30] sm:$0xff]   ;;  %v264_v8 = vld [vmem:[#allocation5 + $0x38] sm:$0xff]   ;;  %s195_s6 = sshll.u32 %s348_s1, 4  ;;  %s196_s6 = int_to_ptr.vmem [resolvable:$true] %s195_s6 }
  0x29   :  { %230 = vmatprep.subr.bf16.mxu0 %v346_v0  ;;  %v265_v9 = vld [vmem:[#allocation2] sm:$0xff]   ;;  %s314_s7 = scalar_lea.vmem %s196_s6, 256  ;;  %p319_p3 = scmp.lt.s32.totalorder %s196_s6, %s196_s6 }
  0x2a   :  { %p315_p2 = scmp.ne.s32.totalorder %s196_s6, %s314_s7  ;;  %p320_p4 = scmp.lt.s32.totalorder %s314_s7, %s314_s7 }
  0x2c   :  { %231 = vmatpush3.bf16.msra.mxu0 %v258_v2  ;;  %p321_p5 = por %p320_p4, %p319_p3 }
  0x2d   :  { %232 = vmatprep.subr.bf16.mxu0 %v346_v0 }
  0x2e   :  { %p322_p6 = pnand %p321_p5, %p315_p2 }
  0x30   :  { %233 = vmatpush3.bf16.msra.mxu0 %v259_v3 }
  0x31   :  { %234 = vmatprep.subr.bf16.mxu0 %v346_v0 }
  0x34   :  { %235 = vmatpush3.bf16.msra.mxu0 %v260_v4 }
  0x35   :  { %236 = vmatprep.subr.bf16.mxu0 %v346_v0 }
  0x38   :  { %237 = vmatpush3.bf16.msra.mxu0 %v261_v5 }
  0x39   :  { %238 = vmatprep.subr.bf16.mxu0 %v346_v0 }
  0x3c   :  { %239 = vmatpush3.bf16.msra.mxu0 %v262_v6 }
  0x3d   :  { %240 = vmatprep.subr.bf16.mxu0 %v346_v0 }
  0x40   :  { %241 = vmatpush3.bf16.msra.mxu0 %v263_v7 }
  0x41   :  { %242 = vmatprep.subr.bf16.mxu0 %v346_v0 }
  0x44   :  { %243 = vmatpush3.bf16.msra.mxu0 %v264_v8 }
  0x47   :  { %245 = vmatmul.mubr.bf16.vlgmr.msra.gmra.mrb[0].mxu0 %v265_v9 }
 0x11a   :  { %v160_v10 = vpop.f32.mrb[0].mxu0 }
 0x11b   :  { %v246_v11 = vpop.f32.mrb[1].mxu0  ;;  %v176_v14 = vmul.f32 %v160_v10, %v160_v10 }
 0x11c   :  { %v163_v12 = vpop.f32.mrb[2].mxu0 }
 0x11d   :  { %v247_v13 = vpop.f32.mrb[3].mxu0  ;;  %178 = vadd.xlane.f32.xlu0 %v176_v14  ;;  %v177_v15 = vmul.f32 %v163_v12, %v163_v12 }
 0x121   :  { %180 = vadd.xlane.f32.xlu0 %v177_v15 }
 0x1aa   :  { %v179_v16 = vpop.xlane.xlu0 %178 }
 0x1ab   :  { %v182_v17 = vmax.f32 %v179_v16, 1e-24 }
 0x1ad   :  { %266 = vrsqrt.f32 %v182_v17 }
 0x1ae   :  { %v181_v18 = vpop.xlane.xlu0 %180 }
 0x1af   :  { %v183_v19 = vmax.f32 %v181_v18, 1e-24 }
 0x1b1   :  { %268 = vrsqrt.f32 %v183_v19 }
 0x1b7   :  { %v267_v20 = vpop.eup %266 }
 0x1b8   :  { %v186_v21 = vmul.f32 %v267_v20, %v160_v10 }
 0x1ba   :  { %188 = vst [vmem:[#allocation7] sm:$0xff] %v186_v21 }
 0x1bb   :  { %v269_v22 = vpop.eup %268 }
 0x1bc   :  { %v187_v23 = vmul.f32 %v269_v22, %v163_v12 }
 0x1be   :  { %189 = vst [vmem:[#allocation7 + $0x8] sm:$0xff] %v187_v23 }
 0x1bf   :  { %325 = shalt.err (!%p322_p6)
}
 0x1c0   :  { %s326_s10 = scalar_lea.hbm %s404_s2, 256 }
 0x1c1   :  { %p327_p7 = scmp.ne.s32.totalorder %s404_s2, %s326_s10  ;;  %p330_p8 = scmp.lt.u32.totalorder %s326_s10, %s404_s2 }
 0x1c3   :  { %p332_p9 = pnand %p330_p8, %p327_p7 }
 0x1c5   :  { %335 = shalt.err (!%p332_p9)
}
 0x1c6   :  { %s349_s15 = smov 128   ;;  %s350_s16 = smov 8  }
 0x1c7   :  { %201 = dma.vmem_to_hbm [thread:$0]  %s196_s6, 256, %s404_s2, [#allocation4], %s349_s15, %s349_s15, %s350_s16  }
 0x1c8   :  { %340 = dma.done.wait [#allocation4], 256  }
 0x1c9   :  { %341 = vsyncadd [#allocation4], 4294967040 }
 0x1ca   :  { %205 = vsyncpa [#allocation3], 1 }
 0x1cb   :  { %206 = vsyncpa [#allocation6], 1 }
 0x1cc   :  { %207 = vsyncpa [#allocation4], 1 }

</bundles_post_ra>
